<compile_context>
chip_gen: v7x
topology: tpu7x:2x2x1
jax: 0.10.0
libtpu: 0.0.40
codegen_flags: <defaults>
</compile_context>

<pallas_src>
import functools

import jax
import jax.numpy as jnp
from jax.experimental import pallas as pl
from jax.experimental.pallas import tpu as pltpu

KERNEL_MUL = 2.0
KERNEL_NUM = 5


def _gram_kernel(src_ref, tgt_ref, ss_ref, st_ref, tt_ref):
    """grid = (n_split, nk_per_core).

    Axis 0 ("parallel") picks which contiguous slice of the feature dim this
    core reduces; axis 1 ("arbitrary") walks that slice chunk by chunk.  The
    three (1, B, B) output blocks keep the same block index across axis 1, so
    they stay resident in VMEM and are used directly as f32 accumulators.
    """
    k = pl.program_id(1)

    @pl.when(k == 0)
    def _init():
        ss_ref[...] = jnp.zeros_like(ss_ref)
        st_ref[...] = jnp.zeros_like(st_ref)
        tt_ref[...] = jnp.zeros_like(tt_ref)

    s = src_ref[...]  # (B, TK), native dtype
    t = tgt_ref[...]  # (B, TK)

    # Contract over the last dim of BOTH operands: no explicit transpose,
    # no (D, B) copy, straight to the MXU with f32 accumulation.
    dn = (((1,), (1,)), ((), ()))
    ss_ref[0] += jax.lax.dot_general(s, s, dn, preferred_element_type=jnp.float32)
    st_ref[0] += jax.lax.dot_general(s, t, dn, preferred_element_type=jnp.float32)
    tt_ref[0] += jax.lax.dot_general(t, t, dn, preferred_element_type=jnp.float32)
    # TODO(synk): for B <= 128 on the 256-wide v6e/v7x MXU, stacking s and t
    # into one (2B, TK) operand and issuing a single dot_general would cut
    # vmatmul pushes ~3x (33% redundant FLOPs); only a win when MXU-slot
    # limited rather than DMA limited, so left as a follow-up.


def _physical_vmem_bytes():
    """Per-TensorCore physical VMEM; conservative v7x fallback (64 MiB)."""
    try:
        cap = getattr(pltpu.get_tpu_info(), "vmem_capacity_bytes", None)
        if cap:
            return int(cap)
    except Exception:  # detection is best-effort only
        pass
    return 64 * 1024 * 1024


def _plan_vmem_limit():
    """Scoped-VMEM request: 3/4 of physical, capped at 96 MiB.
    -> 96 MiB on 128-MiB parts (v5e/v6e), 48 MiB on 64-MiB parts (v7x)."""
    return min((3 * _physical_vmem_bytes()) // 4, 96 * 1024 * 1024)


def _choose_tk(b, d_pad, itemsize, budget_bytes):
    """Largest lane-aligned (multiple of 128) divisor of d_pad whose
    double-buffered two-input footprint (2 inputs x 2 buffers x B x tk x
    itemsize) fits the budget.  Handles non-power-of-two d_pad/128."""
    assert d_pad % 128 == 0, d_pad
    m = d_pad // 128
    per_unit = 2 * 2 * b * 128 * itemsize  # bytes per 128 feature columns
    max_q = max(budget_bytes // per_unit, 1)
    best = 1
    q = 1
    while q * q <= m:
        if m % q == 0:
            for cand in (q, m // q):
                if cand <= max_q and cand > best:
                    best = cand
        q += 1
    return 128 * best


@functools.partial(jax.jit, static_argnums=(2, 3, 4, 5, 6, 7))
def _mmd_forward(source, target, d_pad, tk, n_split, nk_per, vmem_limit_bytes,
                 cast_to_bf16):
    B = source.shape[0]
    src = jnp.reshape(source, (B, -1))
    tgt = jnp.reshape(target, (B, -1))
    if cast_to_bf16 and src.dtype == jnp.float32:
        # Halves streamed HBM bytes in the mem-bound regime; accumulation stays
        # f32 on the MXU.  Precision tradeoff vs. the reference's
        # diff-then-square L2 — validate tolerance at production B/D.
        src = src.astype(jnp.bfloat16)
        tgt = tgt.astype(jnp.bfloat16)
    D = src.shape[1]
    if d_pad != D:
        # Zero feature columns contribute nothing to the Gram blocks.
        src = jnp.pad(src, ((0, 0), (0, d_pad - D)))
        tgt = jnp.pad(tgt, ((0, 0), (0, d_pad - D)))

    itemsize = jnp.dtype(src.dtype).itemsize
    cost = pl.CostEstimate(
        flops=2 * 3 * B * B * d_pad,
        transcendentals=0,
        bytes_accessed=2 * B * d_pad * itemsize + 3 * n_split * B * B * 4,
    )
    gram = jax.ShapeDtypeStruct((n_split, B, B), jnp.float32)

    ss_p, st_p, tt_p = pl.pallas_call(
        _gram_kernel,
        out_shape=(gram, gram, gram),
        grid=(n_split, nk_per),
        in_specs=[
            pl.BlockSpec((B, tk), lambda c, k: (0, c * nk_per + k)),
            pl.BlockSpec((B, tk), lambda c, k: (0, c * nk_per + k)),
        ],
        out_specs=(
            pl.BlockSpec((1, B, B), lambda c, k: (c, 0, 0)),
            pl.BlockSpec((1, B, B), lambda c, k: (c, 0, 0)),
            pl.BlockSpec((1, B, B), lambda c, k: (c, 0, 0)),
        ),
        compiler_params=pltpu.CompilerParams(
            dimension_semantics=("parallel", "arbitrary"),
            vmem_limit_bytes=vmem_limit_bytes,
        ),
        cost_estimate=cost,
    )(src, tgt)

    # ---- O(B^2) epilogue in plain JAX (tiny; keeps the kernel pure
    # matmul+DMA and off v7x's 64 MiB VMEM).  Combine per-core partials first.
    ss = jnp.sum(ss_p, axis=0)
    st = jnp.sum(st_p, axis=0)
    tt = jnp.sum(tt_p, axis=0)

    ds = jnp.diagonal(ss)  # ||s_i||^2 off the Gram diagonal (no O(N*D) pass)
    dt = jnp.diagonal(tt)  # ||t_i||^2
    # Pairwise squared L2, clamped at 0 to guard catastrophic cancellation.
    l2_ss = jnp.maximum(ds[:, None] + ds[None, :] - 2.0 * ss, 0.0)
    l2_tt = jnp.maximum(dt[:, None] + dt[None, :] - 2.0 * tt, 0.0)
    l2_st = jnp.maximum(ds[:, None] + dt[None, :] - 2.0 * st, 0.0)

    # Data-dependent bandwidth over the full (2B, 2B) distance matrix:
    # full L2 = [[l2_ss, l2_st], [l2_st^T, l2_tt]]  =>  sum uses 2*sum(l2_st).
    n = 2.0 * B
    total_l2 = jnp.sum(l2_ss) + jnp.sum(l2_tt) + 2.0 * jnp.sum(l2_st)
    bandwidth = total_l2 / (n * n - n)
    bandwidth = bandwidth / (KERNEL_MUL ** (KERNEL_NUM // 2))
    # Cheap insurance against source == target / constant data (the PyTorch
    # reference would divide by zero here).
    bandwidth = jnp.maximum(bandwidth, jnp.asarray(1e-30, jnp.float32))

    # loss = mean(XX + YY - XY - YX); the kernel matrix is symmetric, so
    # sum(YX) == sum(XY) -> no sign masks needed.
    loss = jnp.asarray(0.0, jnp.float32)
    for i in range(KERNEL_NUM):
        inv_bw = 1.0 / (bandwidth * (KERNEL_MUL ** i))
        loss = loss + (jnp.sum(jnp.exp(-l2_ss * inv_bw))
                       + jnp.sum(jnp.exp(-l2_tt * inv_bw))
                       - 2.0 * jnp.sum(jnp.exp(-l2_st * inv_bw)))
    return loss / float(B * B)


def mmd_loss(source, target, tk=None, cast_to_bf16=False):
    """MMDLoss.forward with the module defaults (kernel_mul=2.0, kernel_num=5,
    fix_sigma=None, num_samples=None)."""
    # TODO(synk): num_samples-based random.choices subsampling is host-RNG
    # logic and is skipped (module default num_samples=None).
    B = int(source.shape[0])
    D = 1
    for s in source.shape[1:]:
        D *= int(s)
    d_pad = ((D + 127) // 128) * 128  # lane-align the feature dim

    dtype = jnp.bfloat16 if cast_to_bf16 else source.dtype
    itemsize = jnp.dtype(dtype).itemsize

    vmem_limit = _plan_vmem_limit()
    # Leave room for the double-buffered (1,B,B) f32 Gram accumulators plus
    # generous misc headroom; the rest feeds the input-chunk double buffers.
    budget = max(vmem_limit - 2 * 3 * B * B * 4 - (8 << 20), 1 << 20)
    if tk is None:
        tk = _choose_tk(B, d_pad, itemsize, budget)
    assert d_pad % tk == 0 and (tk % 128 == 0 or tk == d_pad), (d_pad, tk)

    nk = d_pad // tk
    if nk % 2 == 0:
        n_split, nk_per = 2, nk // 2   # feeds both TensorCores on v7x
    else:
        n_split, nk_per = 1, nk
    return _mmd_forward(source, target, d_pad, tk, n_split, nk_per,
                        vmem_limit, bool(cast_to_bf16))


def _mmd_loss_ref(source, target):
    """Pure-JAX reference mirroring the PyTorch code (diff-squared L2)."""
    B = source.shape[0]
    src = jnp.reshape(source, (B, -1)).astype(jnp.float32)
    tgt = jnp.reshape(target, (B, -1)).astype(jnp.float32)
    total = jnp.concatenate([src, tgt], axis=0)
    n = total.shape[0]
    diff = total[None, :, :] - total[:, None, :]
    l2 = jnp.sum(diff * diff, axis=2)
    bw = jnp.sum(l2) / (n * n - n)
    bw = bw / (KERNEL_MUL ** (KERNEL_NUM // 2))
    kern = sum(jnp.exp(-l2 / (bw * KERNEL_MUL ** i)) for i in range(KERNEL_NUM))
    XX = kern[:B, :B]
    YY = kern[B:, B:]
    XY = kern[:B, B:]
    YX = kern[B:, :B]
    return jnp.mean(XX + YY - XY - YX)


if __name__ == "__main__":
    key = jax.random.PRNGKey(0)
    k1, k2 = jax.random.split(key)
    # NCHW inputs, as the PyTorch module would receive from a conv feature map.
    source = jax.random.normal(k1, (2, 4, 16, 16), dtype=jnp.float32)
    target = jax.random.normal(k2, (2, 4, 16, 16), dtype=jnp.float32) + 0.5

    ref = _mmd_loss_ref(source, target)

    # Default chunking (single D chunk at this small size).
    loss = jax.block_until_ready(mmd_loss(source, target))
    assert jnp.allclose(loss, ref, rtol=1e-4, atol=1e-5), (loss, ref)

    # Forced multi-chunk grid: exercises the tiled reduction plus the 2-way
    # "parallel" feature split (uses both TensorCores on v7x).
    loss_tiled = jax.block_until_ready(mmd_loss(source, target, tk=256))
    assert jnp.allclose(loss_tiled, ref, rtol=1e-4, atol=1e-5), (loss_tiled, ref)

    # Unaligned feature dim (D = 5*9*9 = 405): exercises the zero-padding path.
    k3, k4 = jax.random.split(k2)
    source_u = jax.random.normal(k3, (2, 5, 9, 9), dtype=jnp.float32)
    target_u = jax.random.normal(k4, (2, 5, 9, 9), dtype=jnp.float32) + 0.25
    ref_u = _mmd_loss_ref(source_u, target_u)
    loss_u = jax.block_until_ready(mmd_loss(source_u, target_u))
    assert jnp.allclose(loss_u, ref_u, rtol=1e-4, atol=1e-5), (loss_u, ref_u)

    print("KERNEL_OK")
</pallas_src>

<mosaic_0001>
module attributes {stable_mosaic.version = 11 : i64} {
  func.func @_gram_kernel(%arg0: i32, %arg1: i32, %arg2: memref<2x1024xf32, #tpu.memory_space<vmem>>, %arg3: memref<2x1024xf32, #tpu.memory_space<vmem>>, %arg4: memref<1x2x2xf32, #tpu.memory_space<vmem>>, %arg5: memref<1x2x2xf32, #tpu.memory_space<vmem>>, %arg6: memref<1x2x2xf32, #tpu.memory_space<vmem>>) attributes {dimension_semantics = [#tpu.dimension_semantics<parallel>, #tpu.dimension_semantics<arbitrary>], iteration_bounds = array<i64: 1, 1>, scalar_prefetch = 0 : i64, scratch_operands = 0 : i64, tpu.core_type = #tpu.core_type<tc>, window_params = [{transform_indices = @transform_0, window_bounds = array<i64: 2, 1024>}, {transform_indices = @transform_1, window_bounds = array<i64: 2, 1024>}, {transform_indices = @transform_2, window_bounds = array<i64: 1, 2, 2>}, {transform_indices = @transform_3, window_bounds = array<i64: 1, 2, 2>}, {transform_indices = @transform_4, window_bounds = array<i64: 1, 2, 2>}]} {
    %c0_i32 = arith.constant 0 : i32
    %0 = arith.cmpi eq, %arg1, %c0_i32 : i32
    %1 = arith.extui %0 : i1 to i32
    %c0_i32_0 = arith.constant 0 : i32
    %2 = arith.cmpi ne, %1, %c0_i32_0 : i32
    scf.if %2 {
      %cst_24 = arith.constant 0.000000e+00 : f32
      %26 = vector.broadcast %cst_24 : f32 to vector<1x2x2xf32>
      %c0_25 = arith.constant 0 : index
      %c0_26 = arith.constant 0 : index
      %c0_27 = arith.constant 0 : index
      %27 = vector.load %arg4[%c0_25, %c0_26, %c0_27] : memref<1x2x2xf32, #tpu.memory_space<vmem>>, vector<1x2x2xf32>
      tpu.vector_store %arg4[%c0_25, %c0_26, %c0_27], %26 {strides = array<i32>} : memref<1x2x2xf32, #tpu.memory_space<vmem>>, vector<1x2x2xf32>,
      %cst_28 = arith.constant 0.000000e+00 : f32
      %28 = vector.broadcast %cst_28 : f32 to vector<1x2x2xf32>
      %c0_29 = arith.constant 0 : index
      %c0_30 = arith.constant 0 : index
      %c0_31 = arith.constant 0 : index
      %29 = vector.load %arg5[%c0_29, %c0_30, %c0_31] : memref<1x2x2xf32, #tpu.memory_space<vmem>>, vector<1x2x2xf32>
      tpu.vector_store %arg5[%c0_29, %c0_30, %c0_31], %28 {strides = array<i32>} : memref<1x2x2xf32, #tpu.memory_space<vmem>>, vector<1x2x2xf32>,
      %cst_32 = arith.constant 0.000000e+00 : f32
      %30 = vector.broadcast %cst_32 : f32 to vector<1x2x2xf32>
      %c0_33 = arith.constant 0 : index
      %c0_34 = arith.constant 0 : index
      %c0_35 = arith.constant 0 : index
      %31 = vector.load %arg6[%c0_33, %c0_34, %c0_35] : memref<1x2x2xf32, #tpu.memory_space<vmem>>, vector<1x2x2xf32>
      tpu.vector_store %arg6[%c0_33, %c0_34, %c0_35], %30 {strides = array<i32>} : memref<1x2x2xf32, #tpu.memory_space<vmem>>, vector<1x2x2xf32>,
    } else {
    }
    %c0 = arith.constant 0 : index
    %c0_1 = arith.constant 0 : index
    %3 = vector.load %arg2[%c0, %c0_1] : memref<2x1024xf32, #tpu.memory_space<vmem>>, vector<2x1024xf32>
    %c0_2 = arith.constant 0 : index
    %c0_3 = arith.constant 0 : index
    %4 = vector.load %arg3[%c0_2, %c0_3] : memref<2x1024xf32, #tpu.memory_space<vmem>>, vector<2x1024xf32>
    %c0_4 = arith.constant 0 : index
    %c0_5 = arith.constant 0 : index
    %c0_6 = arith.constant 0 : index
    %5 = vector.load %arg4[%c0_4, %c0_5, %c0_6] : memref<1x2x2xf32, #tpu.memory_space<vmem>>, vector<1x2x2xf32>
    %6 = vector.shape_cast %5 : vector<1x2x2xf32> to vector<2x2xf32>
    %cst = arith.constant dense<0.000000e+00> : vector<2x2xf32>
    %7 = tpu.matmul %3, %3, %cst {dimension_numbers = #tpu.dot_dimension_numbers<[1], [1], [0], [0], [0, 0, 1, 0], [], []>} : vector<2x1024xf32>, vector<2x1024xf32>, vector<2x2xf32> -> vector<2x2xf32>
    %8 = arith.addf %6, %7 : vector<2x2xf32>
    %c0_7 = arith.constant 0 : index
    %c0_8 = arith.constant 0 : index
    %c0_9 = arith.constant 0 : index
    %9 = vector.load %arg4[%c0_7, %c0_8, %c0_9] : memref<1x2x2xf32, #tpu.memory_space<vmem>>, vector<1x2x2xf32>
    %10 = vector.shape_cast %9 : vector<1x2x2xf32> to vector<2x2xf32>
    %11 = vector.shape_cast %8 : vector<2x2xf32> to vector<1x2x2xf32>
    tpu.vector_store %arg4[%c0_7, %c0_8, %c0_9], %11 {strides = array<i32>} : memref<1x2x2xf32, #tpu.memory_space<vmem>>, vector<1x2x2xf32>,
    %c0_10 = arith.constant 0 : index
    %c0_11 = arith.constant 0 : index
    %c0_12 = arith.constant 0 : index
    %12 = vector.load %arg5[%c0_10, %c0_11, %c0_12] : memref<1x2x2xf32, #tpu.memory_space<vmem>>, vector<1x2x2xf32>
    %13 = vector.shape_cast %12 : vector<1x2x2xf32> to vector<2x2xf32>
    %cst_13 = arith.constant dense<0.000000e+00> : vector<2x2xf32>
    %14 = tpu.matmul %3, %4, %cst_13 {dimension_numbers = #tpu.dot_dimension_numbers<[1], [1], [0], [0], [0, 0, 1, 0], [], []>} : vector<2x1024xf32>, vector<2x1024xf32>, vector<2x2xf32> -> vector<2x2xf32>
    %15 = arith.addf %13, %14 : vector<2x2xf32>
    %c0_14 = arith.constant 0 : index
    %c0_15 = arith.constant 0 : index
    %c0_16 = arith.constant 0 : index
    %16 = vector.load %arg5[%c0_14, %c0_15, %c0_16] : memref<1x2x2xf32, #tpu.memory_space<vmem>>, vector<1x2x2xf32>
    %17 = vector.shape_cast %16 : vector<1x2x2xf32> to vector<2x2xf32>
    %18 = vector.shape_cast %15 : vector<2x2xf32> to vector<1x2x2xf32>
    tpu.vector_store %arg5[%c0_14, %c0_15, %c0_16], %18 {strides = array<i32>} : memref<1x2x2xf32, #tpu.memory_space<vmem>>, vector<1x2x2xf32>,
    %c0_17 = arith.constant 0 : index
    %c0_18 = arith.constant 0 : index
    %c0_19 = arith.constant 0 : index
    %19 = vector.load %arg6[%c0_17, %c0_18, %c0_19] : memref<1x2x2xf32, #tpu.memory_space<vmem>>, vector<1x2x2xf32>
    %20 = vector.shape_cast %19 : vector<1x2x2xf32> to vector<2x2xf32>
    %cst_20 = arith.constant dense<0.000000e+00> : vector<2x2xf32>
    %21 = tpu.matmul %4, %4, %cst_20 {dimension_numbers = #tpu.dot_dimension_numbers<[1], [1], [0], [0], [0, 0, 1, 0], [], []>} : vector<2x1024xf32>, vector<2x1024xf32>, vector<2x2xf32> -> vector<2x2xf32>
    %22 = arith.addf %20, %21 : vector<2x2xf32>
    %c0_21 = arith.constant 0 : index
    %c0_22 = arith.constant 0 : index
    %c0_23 = arith.constant 0 : index
    %23 = vector.load %arg6[%c0_21, %c0_22, %c0_23] : memref<1x2x2xf32, #tpu.memory_space<vmem>>, vector<1x2x2xf32>
    %24 = vector.shape_cast %23 : vector<1x2x2xf32> to vector<2x2xf32>
    %25 = vector.shape_cast %22 : vector<2x2xf32> to vector<1x2x2xf32>
    tpu.vector_store %arg6[%c0_21, %c0_22, %c0_23], %25 {strides = array<i32>} : memref<1x2x2xf32, #tpu.memory_space<vmem>>, vector<1x2x2xf32>,
    return
  }
  func.func @transform_0(%arg0: i32, %arg1: i32) -> (i32, i32) {
    %c1_i32 = arith.constant 1 : i32
    %0 = arith.muli %arg0, %c1_i32 : i32
    %1 = arith.addi %0, %arg1 : i32
    %c0_i32 = arith.constant 0 : i32
    %c0_i32_0 = arith.constant 0 : i32
    return %c0_i32, %1 : i32, i32
  }
  func.func @transform_1(%arg0: i32, %arg1: i32) -> (i32, i32) {
    %c1_i32 = arith.constant 1 : i32
    %0 = arith.muli %arg0, %c1_i32 : i32
    %1 = arith.addi %0, %arg1 : i32
    %c0_i32 = arith.constant 0 : i32
    %c0_i32_0 = arith.constant 0 : i32
    return %c0_i32, %1 : i32, i32
  }
  func.func @transform_2(%arg0: i32, %arg1: i32) -> (i32, i32, i32) {
    %c0_i32 = arith.constant 0 : i32
    %c0_i32_0 = arith.constant 0 : i32
    %c0_i32_1 = arith.constant 0 : i32
    return %arg0, %c0_i32, %c0_i32_0 : i32, i32, i32
  }
  func.func @transform_3(%arg0: i32, %arg1: i32) -> (i32, i32, i32) {
    %c0_i32 = arith.constant 0 : i32
    %c0_i32_0 = arith.constant 0 : i32
    %c0_i32_1 = arith.constant 0 : i32
    return %arg0, %c0_i32, %c0_i32_0 : i32, i32, i32
  }
  func.func @transform_4(%arg0: i32, %arg1: i32) -> (i32, i32, i32) {
    %c0_i32 = arith.constant 0 : i32
    %c0_i32_0 = arith.constant 0 : i32
    %c0_i32_1 = arith.constant 0 : i32
    return %arg0, %c0_i32, %c0_i32_0 : i32, i32, i32
  }
}

</mosaic_0001>

<bundles_post_ra>
// kernel: _mmd_forward.1
= control target key start
LH: loop header
LB: loop body
LE: loop exit
PB: predicated region body
PF: predicated region fallthrough
CT: control target
= control target key end

     0   :  { %v77_v0 = vlaneseq  ;;  %v1038_v2 = vmov 1983009808   ;;  %vm62_vm0 = vcmask 9216   ;;  %v1039_v30 = vmov 0.0   ;;  %s1110_s0 = inlined_call_operand.vmem [shape: f32[2,1024], index: 0, kind: input, shape index: {}]   ;;  %s1111_s1 = inlined_call_operand.vmem [shape: f32[2,1024], index: 1, kind: input, shape index: {}]   ;;  %s1112_s2 = inlined_call_operand.vmem [shape: f32[1,2,2], index: 2, kind: output, shape index: {0}]   ;;  %s1113_s3 = inlined_call_operand.vmem [shape: f32[1,2,2], index: 3, kind: output, shape index: {1}]   ;;  %s1114_s4 = inlined_call_operand.vmem [shape: f32[1,2,2], index: 4, kind: output, shape index: {2}]  }
   0x1   :  { %v66_v1 = vld [vmem:[%s1110_s0] sm:$0xff]  ;;  %v75_v3 = vunpack.c.l.s4 %v1038_v2  ;;  %v67_v4 = vld [vmem:[%s1110_s0 + $0x8] sm:$0xff]  ;;  %63 = vst.msk [vmem:[%s1112_s2] sm:$0x3] %vm62_vm0, %v1039_v30  ;;  %64 = vst.msk [vmem:[%s1113_s3] sm:$0x3] %vm62_vm0, %v1039_v30 }
   0x2   :  { %v78_v5 = vshrl.u32 %v77_v0, 7  ;;  %v73_v7 = vcombine.high %v66_v1, %v66_v1  ;;  %v90_v8 = vcombine.high %v67_v4, %v67_v4  ;;  %v68_v9 = vld [vmem:[%s1111_s1] sm:$0xff]  ;;  %v69_v12 = vld [vmem:[%s1111_s1 + $0x8] sm:$0xff]  ;;  %65 = vst.msk [vmem:[%s1114_s4] sm:$0x3] %vm62_vm0, %v1039_v30 }
   0x3   :  { %v76_v6 = vunpack.c.0.s8 %v75_v3  ;;  %v401_v11 = vcombine.high %v68_v9, %v68_v9  ;;  %v418_v19 = vcombine.high %v69_v12, %v69_v12 }
   0x5   :  { %v79_v10 = vsub.s32 %v76_v6, %v78_v5 }
   0x7   :  { %v80_v13 = vrot.slane %v66_v1, %v79_v10  ;;  %v87_v14 = vrot.slane %v73_v7, %v79_v10  ;;  %v97_v15 = vrot.slane %v67_v4, %v79_v10  ;;  %v104_v16 = vrot.slane %v90_v8, %v79_v10 }
   0x8   :  { %v408_v22 = vrot.slane %v68_v9, %v79_v10  ;;  %v415_v23 = vrot.slane %v401_v11, %v79_v10  ;;  %v425_v24 = vrot.slane %v69_v12, %v79_v10  ;;  %v432_v27 = vrot.slane %v418_v19, %v79_v10  ;;  %v70_v41 = vld [vmem:[%s1112_s2] sm:$0x3] }
   0x9   :  { %v88_v17 = vcombine.high %v80_v13, %v80_v13  ;;  %v89_v18 = vcombine.high %v87_v14, %v87_v14  ;;  %v105_v20 = vcombine.high %v97_v15, %v97_v15  ;;  %v106_v21 = vcombine.high %v104_v16, %v104_v16  ;;  %v398_v54 = vld [vmem:[%s1113_s3] sm:$0x3] }
   0xa   :  { %v416_v25 = vcombine.high %v408_v22, %v408_v22  ;;  %v417_v26 = vcombine.high %v415_v23, %v415_v23  ;;  %v433_v28 = vcombine.high %v425_v24, %v425_v24  ;;  %v434_v29 = vcombine.high %v432_v27, %v432_v27  ;;  %v725_v2 = vld [vmem:[%s1114_s4] sm:$0x3] }
   0xb   :  { %115 = vmatprep.subr.mxu0 %v88_v17  ;;  %185 = vmatprep.subr.mxu1 %v89_v18 }
   0xc   :  { %116 = vmatpush1.xpose.msra.mxu0 %v80_v13  ;;  %186 = vmatpush1.xpose.msra.mxu1 %v87_v14 }
   0xd   :  { %179 = vmatprep.mubr.f32.mxu0 %v88_v17  ;;  %249 = vmatprep.mubr.f32.mxu1 %v89_v18 }
   0xe   :  { %255 = vmatprep.subr.mxu0 %v105_v20  ;;  %325 = vmatprep.subr.mxu1 %v106_v21 }
   0xf   :  { %180 = vmatmul.mubr.f32.vlgmr.msra.gmra.mrb[0].mxu0 %v80_v13  ;;  %250 = vmatmul.mubr.f32.vlgmr.msra.gmra.mrb[0].mxu1 %v87_v14 }
  0x10   :  { %256 = vmatpush1.xpose.msra.mxu0 %v97_v15  ;;  %326 = vmatpush1.xpose.msra.mxu1 %v104_v16 }
  0x11   :  { %319 = vmatprep.mubr.f32.mxu0 %v105_v20  ;;  %389 = vmatprep.mubr.f32.mxu1 %v106_v21 }
  0x12   :  { %443 = vmatprep.subr.mxu0 %v416_v25  ;;  %513 = vmatprep.subr.mxu1 %v417_v26 }
  0x13   :  { %320 = vmatmul.mubr.f32.vlgmr.msra.gmra.mrb[2].mxu0 %v97_v15  ;;  %390 = vmatmul.mubr.f32.vlgmr.msra.gmra.mrb[2].mxu1 %v104_v16 }
  0x14   :  { %444 = vmatpush1.xpose.msra.mxu0 %v408_v22  ;;  %514 = vmatpush1.xpose.msra.mxu1 %v415_v23 }
  0x15   :  { %507 = vmatprep.mubr.f32.mxu0 %v88_v17  ;;  %577 = vmatprep.mubr.f32.mxu1 %v89_v18 }
  0x16   :  { %583 = vmatprep.subr.mxu0 %v433_v28  ;;  %653 = vmatprep.subr.mxu1 %v434_v29 }
  0x17   :  { %508 = vmatmul.mubr.f32.vlgmr.msra.gmra.mrb[4].mxu0 %v80_v13  ;;  %578 = vmatmul.mubr.f32.vlgmr.msra.gmra.mrb[4].mxu1 %v87_v14 }
  0x18   :  { %584 = vmatpush1.xpose.msra.mxu0 %v425_v24  ;;  %654 = vmatpush1.xpose.msra.mxu1 %v432_v27 }
  0x19   :  { %647 = vmatprep.mubr.f32.mxu0 %v105_v20  ;;  %717 = vmatprep.mubr.f32.mxu1 %v106_v21 }
  0x1a   :  { %726 = vmatprep.subr.mxu0 %v416_v25  ;;  %796 = vmatprep.subr.mxu1 %v417_v26 }
  0x1b   :  { %648 = vmatmul.mubr.f32.vlgmr.msra.gmra.mrb[6].mxu0 %v97_v15  ;;  %718 = vmatmul.mubr.f32.vlgmr.msra.gmra.mrb[6].mxu1 %v104_v16 }
  0x1c   :  { %727 = vmatpush1.xpose.msra.mxu0 %v408_v22  ;;  %797 = vmatpush1.xpose.msra.mxu1 %v415_v23 }
  0x1d   :  { %790 = vmatprep.mubr.f32.mxu0 %v416_v25  ;;  %860 = vmatprep.mubr.f32.mxu1 %v417_v26 }
  0x1e   :  { %866 = vmatprep.subr.mxu0 %v433_v28  ;;  %936 = vmatprep.subr.mxu1 %v434_v29 }
  0x1f   :  { %791 = vmatmul.mubr.f32.vlgmr.msra.gmra.mrb[8].mxu0 %v408_v22  ;;  %861 = vmatmul.mubr.f32.vlgmr.msra.gmra.mrb[8].mxu1 %v415_v23 }
  0x20   :  { %867 = vmatpush1.xpose.msra.mxu0 %v425_v24  ;;  %930 = vmatprep.mubr.f32.mxu0 %v433_v28 }
  0x21   :  { %937 = vmatpush1.xpose.msra.mxu1 %v432_v27  ;;  %1000 = vmatprep.mubr.f32.mxu1 %v434_v29 }
  0x23   :  { %931 = vmatmul.mubr.f32.vlgmr.msra.gmra.mrb[10].mxu0 %v425_v24 }
  0x24   :  { %1001 = vmatmul.mubr.f32.vlgmr.msra.gmra.mrb[10].mxu1 %v432_v27 }
  0xe2   :  { %v181_v31 = vpop.f32.mrb[0].mxu0  ;;  %v251_v32 = vpop.f32.mrb[0].mxu1 }
  0xe3   :  { %v183_v33 = vpop.f32.mrb[1].mxu0  ;;  %v252_v34 = vadd.f32 %v251_v32, %v181_v31  ;;  %v253_v35 = vpop.f32.mrb[1].mxu1 }
  0xe6   :  { %v321_v36 = vpop.f32.mrb[2].mxu0  ;;  %v391_v37 = vpop.f32.mrb[2].mxu1 }
  0xe7   :  { %v322_v38 = vadd.f32 %v321_v36, %v252_v34  ;;  %v323_v39 = vpop.f32.mrb[3].mxu0  ;;  %v393_v40 = vpop.f32.mrb[3].mxu1 }
  0xe9   :  { %v392_v42 = vadd.f32 %v391_v37, %v322_v38 }
  0xea   :  { %v509_v43 = vpop.f32.mrb[4].mxu0  ;;  %v579_v44 = vpop.f32.mrb[4].mxu1 }
  0xeb   :  { %v395_v45 = vadd.f32 %v392_v42, %v70_v41  ;;  %v511_v46 = vpop.f32.mrb[5].mxu0  ;;  %v580_v47 = vadd.f32 %v579_v44, %v509_v43  ;;  %v581_v48 = vpop.f32.mrb[5].mxu1 }
  0xed   :  { %397 = vst.msk [vmem:[%s1112_s2] sm:$0x3] %vm62_vm0, %v395_v45 }
  0xee   :  { %v649_v49 = vpop.f32.mrb[6].mxu0  ;;  %v719_v50 = vpop.f32.mrb[6].mxu1 }
  0xef   :  { %v650_v51 = vadd.f32 %v649_v49, %v580_v47  ;;  %v651_v52 = vpop.f32.mrb[7].mxu0  ;;  %v721_v53 = vpop.f32.mrb[7].mxu1 }
  0xf1   :  { %v720_v55 = vadd.f32 %v719_v50, %v650_v51 }
  0xf2   :  { %v792_v56 = vpop.f32.mrb[8].mxu0  ;;  %v862_v57 = vpop.f32.mrb[8].mxu1 }
  0xf3   :  { %v723_v58 = vadd.f32 %v720_v55, %v398_v54  ;;  %v794_v59 = vpop.f32.mrb[9].mxu0  ;;  %v863_v60 = vadd.f32 %v862_v57, %v792_v56  ;;  %v864_v61 = vpop.f32.mrb[9].mxu1 }
  0xf5   :  { %724 = vst.msk [vmem:[%s1113_s3] sm:$0x3] %vm62_vm0, %v723_v58 }
  0xf6   :  { %v932_v62 = vpop.f32.mrb[10].mxu0 }
  0xf7   :  { %v933_v63 = vadd.f32 %v932_v62, %v863_v60  ;;  %v934_v0 = vpop.f32.mrb[11].mxu0  ;;  %v1002_v1 = vpop.f32.mrb[10].mxu1 }
  0xf8   :  { %v1004_v3 = vpop.f32.mrb[11].mxu1 }
  0xf9   :  { %v1003_v4 = vadd.f32 %v1002_v1, %v933_v63 }
  0xfb   :  { %v1006_v5 = vadd.f32 %v1003_v4, %v725_v2 }
  0xfd   :  { %1007 = vst.msk [vmem:[%s1114_s4] sm:$0x3] %vm62_vm0, %v1006_v5 }

</bundles_post_ra>
